<compile_context>
chip_gen: v5e
topology: v5e:2x2
jax: 0.10.0
libtpu: 0.0.40
codegen_flags: <defaults>
</compile_context>

<pallas_src>
import functools

import jax
import jax.numpy as jnp
from jax.experimental import pallas as pl
from jax.experimental.pallas import tpu as pltpu


# ---------------------------------------------------------------------------
# One-time parameter preparation (hoisted out of the per-step forward).
# ---------------------------------------------------------------------------
def prepare_params(params):
    """Pack/transpose/fold the PyTorch-layout parameters once.

    Returns:
      w_gates: (K+H, 4H)  = concat(W_ih^T, W_hh^T)      (gate matmul merge)
      b_gates: (1, 4H)    = b_ih + b_hh                  (bias fold)
      w23:     (H, A)     = W2^T @ W3^T                  (ll2/ll3 fold, exact: no
      b23:     (1, A)     = b2 @ W3^T + b3                nonlinearity in between)
    """
    f32 = jnp.float32
    four_h = params["w_ih"].shape[0]
    H = params["w_hh"].shape[1]
    A = params["w3"].shape[0]

    w_gates = jnp.concatenate(
        [params["w_ih"].T.astype(f32), params["w_hh"].T.astype(f32)], axis=0)
    b_gates = (params["b_ih"] + params["b_hh"]).astype(f32).reshape(1, four_h)
    w3_t = params["w3"].T.astype(f32)                       # (H, A)
    w23 = params["w2"].T.astype(f32) @ w3_t                 # (H, A)
    b23 = (params["b2"].astype(f32).reshape(1, H) @ w3_t
           + params["b3"].astype(f32).reshape(1, A))        # (1, A)
    return {"w_gates": w_gates, "b_gates": b_gates, "w23": w23, "b23": b23}


# ---------------------------------------------------------------------------
# Shared LSTM-cell math (one merged gate matmul, full-vreg activations).
# ---------------------------------------------------------------------------
def _lstm_cell(xh, c_prev, wg, bg, H):
    gates = jnp.dot(xh, wg, preferred_element_type=jnp.float32) + bg   # (1, 4H)
    sig = jax.nn.sigmoid(gates)      # one EUP pass over the full vreg
    th = jnp.tanh(gates)             # one EUP pass over the full vreg
    i_g = sig[:, 0 * H:1 * H]
    f_g = sig[:, 1 * H:2 * H]
    g_g = th[:, 2 * H:3 * H]
    o_g = sig[:, 3 * H:4 * H]
    c_new = f_g * c_prev + i_g * g_g
    h_new = o_g * jnp.tanh(c_new)
    return h_new, c_new


# ---------------------------------------------------------------------------
# Single-step fused kernel: forward()
# ---------------------------------------------------------------------------
def _rqnet_step_kernel(x_ref, h_ref, c_ref, wg_ref, bg_ref, w23_ref, b23_ref,
                       out_ref, h_out_ref, c_out_ref, *, node_size):
    H = node_size
    xh = jnp.concatenate([x_ref[...], h_ref[0]], axis=-1)            # (1, K+H)
    h_new, c_new = _lstm_cell(xh, c_ref[0], wg_ref[...], bg_ref[...], H)
    logits = (jnp.dot(h_new, w23_ref[...], preferred_element_type=jnp.float32)
              + b23_ref[...])                                         # ll3(ll2(.))
    out_ref[0] = logits.astype(out_ref.dtype)
    h_out_ref[0] = h_new.astype(h_out_ref.dtype)
    c_out_ref[0] = c_new.astype(c_out_ref.dtype)


@jax.jit
def rqnet_forward(x, hidden, prepped):
    """RQNet.forward(x): returns (logits (1,1,A), (h_new, c_new) each (1,1,H))."""
    h0, c0 = hidden
    H = h0.shape[-1]
    A = prepped["w23"].shape[-1]
    K = prepped["w_gates"].shape[0] - H

    inp = x.reshape(1, K).astype(jnp.float32)         # x.view(1, 1, -1)
    h0 = h0.astype(jnp.float32)
    c0 = c0.astype(jnp.float32)

    vmem = pl.BlockSpec(memory_space=pltpu.MemorySpace.VMEM)
    kernel = functools.partial(_rqnet_step_kernel, node_size=H)

    logits, h_new, c_new = pl.pallas_call(
        kernel,
        out_shape=(jax.ShapeDtypeStruct((1, 1, A), jnp.float32),
                   jax.ShapeDtypeStruct((1, 1, H), jnp.float32),
                   jax.ShapeDtypeStruct((1, 1, H), jnp.float32)),
        in_specs=[vmem] * 7,
        out_specs=(vmem, vmem, vmem),
        input_output_aliases={1: 1, 2: 2},            # h->h_out, c->c_out in place
    )(inp, h0, c0,
      prepped["w_gates"], prepped["b_gates"], prepped["w23"], prepped["b23"])
    return logits, (h_new, c_new)


# ---------------------------------------------------------------------------
# Sequence kernel: forward_seq() as ONE pallas_call, grid=(T,)
# (weights stay VMEM-resident; h/c carried in VMEM scratch)
# ---------------------------------------------------------------------------
def _rqnet_seq_kernel(x_ref, h0_ref, c0_ref, wg_ref, bg_ref, w23_ref, b23_ref,
                      out_ref, h_out_ref, c_out_ref, h_sc, c_sc, *, node_size):
    H = node_size
    t = pl.program_id(0)

    @pl.when(t == 0)
    def _():
        h_sc[...] = h0_ref[0]
        c_sc[...] = c0_ref[0]

    xh = jnp.concatenate([x_ref[0], h_sc[...]], axis=-1)              # (1, K+H)
    h_new, c_new = _lstm_cell(xh, c_sc[...], wg_ref[...], bg_ref[...], H)
    h_sc[...] = h_new
    c_sc[...] = c_new

    @pl.when(t == pl.num_programs(0) - 1)
    def _():
        logits = (jnp.dot(h_new, w23_ref[...], preferred_element_type=jnp.float32)
                  + b23_ref[...])
        out_ref[0] = logits.astype(out_ref.dtype)
        h_out_ref[0] = h_new.astype(h_out_ref.dtype)
        c_out_ref[0] = c_new.astype(c_out_ref.dtype)


@jax.jit
def rqnet_forward_seq(x_seq, hidden, prepped):
    """RQNet.forward_seq(x): loops the LSTM over x_seq, head on the last step."""
    h0, c0 = hidden
    H = h0.shape[-1]
    A = prepped["w23"].shape[-1]
    KH = prepped["w_gates"].shape[0]
    K = KH - H
    T = x_seq.shape[0]

    xs = x_seq.reshape(T, 1, K).astype(jnp.float32)   # each step: sequence.view(1,1,-1)
    h0 = h0.astype(jnp.float32)
    c0 = c0.astype(jnp.float32)

    kernel = functools.partial(_rqnet_seq_kernel, node_size=H)
    grid_spec = pltpu.PrefetchScalarGridSpec(
        num_scalar_prefetch=0,
        grid=(T,),
        in_specs=[
            pl.BlockSpec((1, 1, K), lambda t: (t, 0, 0)),     # streamed per step
            pl.BlockSpec((1, 1, H), lambda t: (0, 0, 0)),     # initial h (resident)
            pl.BlockSpec((1, 1, H), lambda t: (0, 0, 0)),     # initial c (resident)
            pl.BlockSpec((KH, 4 * H), lambda t: (0, 0)),      # gate weights (resident)
            pl.BlockSpec((1, 4 * H), lambda t: (0, 0)),
            pl.BlockSpec((H, A), lambda t: (0, 0)),           # folded head weights
            pl.BlockSpec((1, A), lambda t: (0, 0)),
        ],
        out_specs=[
            pl.BlockSpec((1, 1, A), lambda t: (0, 0, 0)),
            pl.BlockSpec((1, 1, H), lambda t: (0, 0, 0)),
            pl.BlockSpec((1, 1, H), lambda t: (0, 0, 0)),
        ],
        scratch_shapes=[pltpu.VMEM((1, H), jnp.float32),      # carried h
                        pltpu.VMEM((1, H), jnp.float32)],     # carried c
    )
    logits, h_new, c_new = pl.pallas_call(
        kernel,
        out_shape=(jax.ShapeDtypeStruct((1, 1, A), jnp.float32),
                   jax.ShapeDtypeStruct((1, 1, H), jnp.float32),
                   jax.ShapeDtypeStruct((1, 1, H), jnp.float32)),
        grid_spec=grid_spec,
        compiler_params=pltpu.CompilerParams(dimension_semantics=("arbitrary",)),
    )(xs, h0, c0,
      prepped["w_gates"], prepped["b_gates"], prepped["w23"], prepped["b23"])
    return logits, (h_new, c_new)


# ---------------------------------------------------------------------------
# Pure-JAX references (PyTorch LSTM/Linear math, eval semantics).
# ---------------------------------------------------------------------------
def _ref_cell(x_row, h, c, p, H):
    gates = x_row @ p["w_ih"].T + p["b_ih"] + h @ p["w_hh"].T + p["b_hh"]
    i = jax.nn.sigmoid(gates[:, 0 * H:1 * H])
    f = jax.nn.sigmoid(gates[:, 1 * H:2 * H])
    g = jnp.tanh(gates[:, 2 * H:3 * H])
    o = jax.nn.sigmoid(gates[:, 3 * H:4 * H])
    c_n = f * c + i * g
    h_n = o * jnp.tanh(c_n)
    return h_n, c_n


def _ref_head(h, p):
    y = h @ p["w2"].T + p["b2"]
    return y @ p["w3"].T + p["b3"]


def _reference_forward(x, h0, c0, p, H):
    h, c = _ref_cell(x.reshape(1, -1), h0.reshape(1, -1), c0.reshape(1, -1), p, H)
    return _ref_head(h, p).reshape(1, 1, -1), h.reshape(1, 1, -1), c.reshape(1, 1, -1)


def _reference_forward_seq(x_seq, h0, c0, p, H):
    h, c = h0.reshape(1, -1), c0.reshape(1, -1)
    for t in range(x_seq.shape[0]):
        h, c = _ref_cell(x_seq[t].reshape(1, -1), h, c, p, H)
    return _ref_head(h, p).reshape(1, 1, -1), h.reshape(1, 1, -1), c.reshape(1, 1, -1)


if __name__ == "__main__":
    INPUT_SIZE, NODE_SIZE, NO_ACTIONS, SEQ_LEN = 32, 32, 4, 8

    key = jax.random.PRNGKey(0)
    ks = jax.random.split(key, 14)

    # Observation: any shape that flattens to input_size (x.view(1, 1, -1)).
    x = jax.random.normal(ks[0], (4, 8), jnp.float32)
    x_seq = jax.random.normal(ks[1], (SEQ_LEN, 4, 8), jnp.float32)
    # hidden_running / hidden_update ~ torch.randn(1, 1, node_size)
    h0 = jax.random.normal(ks[2], (1, 1, NODE_SIZE), jnp.float32)
    c0 = jax.random.normal(ks[3], (1, 1, NODE_SIZE), jnp.float32)

    s = 0.1
    params = {
        "w_ih": s * jax.random.normal(ks[4], (4 * NODE_SIZE, INPUT_SIZE), jnp.float32),
        "w_hh": s * jax.random.normal(ks[5], (4 * NODE_SIZE, NODE_SIZE), jnp.float32),
        "b_ih": s * jax.random.normal(ks[6], (4 * NODE_SIZE,), jnp.float32),
        "b_hh": s * jax.random.normal(ks[7], (4 * NODE_SIZE,), jnp.float32),
        "w2":   s * jax.random.normal(ks[8], (NODE_SIZE, NODE_SIZE), jnp.float32),
        "b2":   s * jax.random.normal(ks[9], (NODE_SIZE,), jnp.float32),
        "w3":   s * jax.random.normal(ks[10], (NO_ACTIONS, NODE_SIZE), jnp.float32),
        "b3":   s * jax.random.normal(ks[11], (NO_ACTIONS,), jnp.float32),
    }

    # One-time weight prep (transposes / folds hoisted out of the hot path).
    prepped = jax.tree_util.tree_map(jnp.asarray, prepare_params(params))

    # ---- single-step forward() ----
    out, (h_new, c_new) = rqnet_forward(x, (h0, c0), prepped)
    jax.block_until_ready(out)
    assert out.shape == (1, 1, NO_ACTIONS), out.shape

    ref_out, ref_h, ref_c = _reference_forward(x, h0, c0, params, NODE_SIZE)
    assert jnp.allclose(out, ref_out, atol=1e-4, rtol=1e-4), (out, ref_out)
    assert jnp.allclose(h_new, ref_h, atol=1e-4, rtol=1e-4)
    assert jnp.allclose(c_new, ref_c, atol=1e-4, rtol=1e-4)

    # ---- sequence forward_seq() (single pallas_call over all timesteps) ----
    seq_out, (h_u, c_u) = rqnet_forward_seq(x_seq, (h0, c0), prepped)
    jax.block_until_ready(seq_out)
    assert seq_out.shape == (1, 1, NO_ACTIONS), seq_out.shape

    ref_sout, ref_sh, ref_sc = _reference_forward_seq(x_seq, h0, c0, params, NODE_SIZE)
    assert jnp.allclose(seq_out, ref_sout, atol=1e-4, rtol=1e-4), (seq_out, ref_sout)
    assert jnp.allclose(h_u, ref_sh, atol=1e-4, rtol=1e-4)
    assert jnp.allclose(c_u, ref_sc, atol=1e-4, rtol=1e-4)

    print("KERNEL_OK")
</pallas_src>

<mosaic_0001>
module attributes {stable_mosaic.version = 11 : i64} {
  func.func @_rqnet_step_kernel(%arg0: memref<1x32xf32, #tpu.memory_space<vmem>>, %arg1: memref<1x1x32xf32, #tpu.memory_space<vmem>>, %arg2: memref<1x1x32xf32, #tpu.memory_space<vmem>>, %arg3: memref<64x128xf32, #tpu.memory_space<vmem>>, %arg4: memref<1x128xf32, #tpu.memory_space<vmem>>, %arg5: memref<32x4xf32, #tpu.memory_space<vmem>>, %arg6: memref<1x4xf32, #tpu.memory_space<vmem>>, %arg7: memref<1x1x4xf32, #tpu.memory_space<vmem>>, %arg8: memref<1x1x32xf32, #tpu.memory_space<vmem>>, %arg9: memref<1x1x32xf32, #tpu.memory_space<vmem>>) attributes {dimension_semantics = [], scalar_prefetch = 0 : i64, scratch_operands = 0 : i64, tpu.core_type = #tpu.core_type<tc>} {
    %c0 = arith.constant 0 : index
    %c0_0 = arith.constant 0 : index
    %0 = vector.load %arg0[%c0, %c0_0] : memref<1x32xf32, #tpu.memory_space<vmem>>, vector<1x32xf32>
    %c0_1 = arith.constant 0 : index
    %c0_2 = arith.constant 0 : index
    %c0_3 = arith.constant 0 : index
    %1 = vector.load %arg1[%c0_1, %c0_2, %c0_3] : memref<1x1x32xf32, #tpu.memory_space<vmem>>, vector<1x1x32xf32>
    %2 = vector.shape_cast %1 : vector<1x1x32xf32> to vector<1x32xf32>
    %3 = tpu.concatenate %0, %2 in 1 : vector<1x32xf32>, vector<1x32xf32> -> vector<1x64xf32>
    %c0_4 = arith.constant 0 : index
    %c0_5 = arith.constant 0 : index
    %c0_6 = arith.constant 0 : index
    %4 = vector.load %arg2[%c0_4, %c0_5, %c0_6] : memref<1x1x32xf32, #tpu.memory_space<vmem>>, vector<1x1x32xf32>
    %5 = vector.shape_cast %4 : vector<1x1x32xf32> to vector<1x32xf32>
    %c0_7 = arith.constant 0 : index
    %c0_8 = arith.constant 0 : index
    %6 = vector.load %arg3[%c0_7, %c0_8] : memref<64x128xf32, #tpu.memory_space<vmem>>, vector<64x128xf32>
    %c0_9 = arith.constant 0 : index
    %c0_10 = arith.constant 0 : index
    %7 = vector.load %arg4[%c0_9, %c0_10] : memref<1x128xf32, #tpu.memory_space<vmem>>, vector<1x128xf32>
    %cst = arith.constant dense<0.000000e+00> : vector<1x128xf32>
    %8 = tpu.matmul %3, %6, %cst {dimension_numbers = #tpu.dot_dimension_numbers<[1], [0], [0], [1], [0, 0, 1, 1], [], []>} : vector<1x64xf32>, vector<64x128xf32>, vector<1x128xf32> -> vector<1x128xf32>
    %9 = arith.addf %8, %7 : vector<1x128xf32>
    %10 = arith.negf %9 : vector<1x128xf32>
    %11 = math.exp %10 : vector<1x128xf32>
    %cst_11 = arith.constant 1.000000e+00 : f32
    %12 = vector.broadcast %cst_11 : f32 to vector<1x128xf32>
    %13 = arith.addf %12, %11 : vector<1x128xf32>
    %14 = arith.divf %12, %13 : vector<1x128xf32>
    %15 = math.tanh %9 : vector<1x128xf32>
    %16 = vector.extract_strided_slice %14 {offsets = [0, 0], sizes = [1, 32], strides = [1, 1]} : vector<1x128xf32> to vector<1x32xf32>
    %17 = vector.extract_strided_slice %14 {offsets = [0, 32], sizes = [1, 32], strides = [1, 1]} : vector<1x128xf32> to vector<1x32xf32>
    %18 = vector.extract_strided_slice %15 {offsets = [0, 64], sizes = [1, 32], strides = [1, 1]} : vector<1x128xf32> to vector<1x32xf32>
    %19 = vector.extract_strided_slice %14 {offsets = [0, 96], sizes = [1, 32], strides = [1, 1]} : vector<1x128xf32> to vector<1x32xf32>
    %20 = arith.mulf %17, %5 : vector<1x32xf32>
    %21 = arith.mulf %16, %18 : vector<1x32xf32>
    %22 = arith.addf %20, %21 : vector<1x32xf32>
    %23 = math.tanh %22 : vector<1x32xf32>
    %24 = arith.mulf %19, %23 : vector<1x32xf32>
    %c0_12 = arith.constant 0 : index
    %c0_13 = arith.constant 0 : index
    %25 = vector.load %arg5[%c0_12, %c0_13] : memref<32x4xf32, #tpu.memory_space<vmem>>, vector<32x4xf32>
    %cst_14 = arith.constant dense<0.000000e+00> : vector<1x4xf32>
    %26 = tpu.matmul %24, %25, %cst_14 {dimension_numbers = #tpu.dot_dimension_numbers<[1], [0], [0], [1], [0, 0, 1, 1], [], []>} : vector<1x32xf32>, vector<32x4xf32>, vector<1x4xf32> -> vector<1x4xf32>
    %c0_15 = arith.constant 0 : index
    %c0_16 = arith.constant 0 : index
    %27 = vector.load %arg6[%c0_15, %c0_16] : memref<1x4xf32, #tpu.memory_space<vmem>>, vector<1x4xf32>
    %28 = arith.addf %26, %27 : vector<1x4xf32>
    %c0_17 = arith.constant 0 : index
    %c0_18 = arith.constant 0 : index
    %c0_19 = arith.constant 0 : index
    %29 = vector.load %arg7[%c0_17, %c0_18, %c0_19] : memref<1x1x4xf32, #tpu.memory_space<vmem>>, vector<1x1x4xf32>
    %30 = vector.shape_cast %29 : vector<1x1x4xf32> to vector<1x4xf32>
    %31 = vector.shape_cast %28 : vector<1x4xf32> to vector<1x1x4xf32>
    tpu.vector_store %arg7[%c0_17, %c0_18, %c0_19], %31 {strides = array<i32>} : memref<1x1x4xf32, #tpu.memory_space<vmem>>, vector<1x1x4xf32>,
    %c0_20 = arith.constant 0 : index
    %c0_21 = arith.constant 0 : index
    %c0_22 = arith.constant 0 : index
    %32 = vector.load %arg8[%c0_20, %c0_21, %c0_22] : memref<1x1x32xf32, #tpu.memory_space<vmem>>, vector<1x1x32xf32>
    %33 = vector.shape_cast %32 : vector<1x1x32xf32> to vector<1x32xf32>
    %34 = vector.shape_cast %24 : vector<1x32xf32> to vector<1x1x32xf32>
    tpu.vector_store %arg8[%c0_20, %c0_21, %c0_22], %34 {strides = array<i32>} : memref<1x1x32xf32, #tpu.memory_space<vmem>>, vector<1x1x32xf32>,
    %c0_23 = arith.constant 0 : index
    %c0_24 = arith.constant 0 : index
    %c0_25 = arith.constant 0 : index
    %35 = vector.load %arg9[%c0_23, %c0_24, %c0_25] : memref<1x1x32xf32, #tpu.memory_space<vmem>>, vector<1x1x32xf32>
    %36 = vector.shape_cast %35 : vector<1x1x32xf32> to vector<1x32xf32>
    %37 = vector.shape_cast %22 : vector<1x32xf32> to vector<1x1x32xf32>
    tpu.vector_store %arg9[%c0_23, %c0_24, %c0_25], %37 {strides = array<i32>} : memref<1x1x32xf32, #tpu.memory_space<vmem>>, vector<1x1x32xf32>,
    return
  }
}

</mosaic_0001>

<bundles_post_ra>
// kernel: rqnet_forward.1
= control target key start
LH: loop header
LB: loop body
LE: loop exit
PB: predicated region body
PF: predicated region fallthrough
CT: control target
= control target key end

     0   :  { %15 = vsyncpa [#allocation3], 0  ;;  %s532_s0 = inlined_call_operand.vmem [shape: f32[1,32], index: 0, kind: input, shape index: {}]   ;;  %s533_s1 = inlined_call_operand.hbm [shape: f32[1,1,32], index: 1, kind: input, shape index: {}, may-alias: {1,8}]   ;;  %s534_s2 = inlined_call_operand.hbm [shape: f32[1,1,32], index: 2, kind: input, shape index: {}, may-alias: {2,9}]   ;;  %s535_s3 = inlined_call_operand.hbm [shape: f32[64,128], index: 3, kind: input, shape index: {}]   ;;  %s536_s4 = inlined_call_operand.vmem [shape: f32[1,128], index: 4, kind: input, shape index: {}]   ;;  %s537_s5 = inlined_call_operand.vmem [shape: f32[32,4], index: 5, kind: input, shape index: {}]   ;;  %s538_s6 = inlined_call_operand.vmem [shape: f32[1,4], index: 6, kind: input, shape index: {}]   ;;  %s539_s7 = inlined_call_operand.hbm [shape: f32[1,1,4], index: 7, kind: output, shape index: {0}]   ;;  %s540_s8 = inlined_call_operand.hbm [shape: f32[1,1,32], index: 8, kind: output, shape index: {1}, may-alias: {1,8}]   ;;  %s541_s9 = inlined_call_operand.hbm [shape: f32[1,1,32], index: 9, kind: output, shape index: {2}, may-alias: {2,9}]  }
   0x1   :  { %16 = vsyncpa [#allocation6], 0 }
   0x2   :  { %17 = vsyncpa [#allocation4], 0  ;;  %s37_s11 = sshll.u32 %s534_s2, 4  ;;  %s38_s11 = int_to_ptr.hbm [resolvable:$true] %s37_s11 }
   0x3   :  { %18 = vsyncpa [#allocation10], 0  ;;  %s424_s12 = smov [#allocation5]   ;;  %s26_s16 = sshll.u32 %s533_s1, 4  ;;  %s27_s16 = int_to_ptr.hbm [resolvable:$true] %s26_s16 }
   0x4   :  { %s39_s13 = sshll.u32 %s424_s12, 4  ;;  %s425_s17 = smov [#allocation2]   ;;  %s40_s13 = int_to_ptr.vmem [resolvable:$true] %s39_s13 }
   0x5   :  { %42 = dma.hbm_to_vmem [thread:$0]  %s38_s11, 16, %s40_s13, [#allocation6]  }
   0x6   :  { %s28_s18 = sshll.u32 %s425_s17, 4  ;;  %s47_s21 = sshll.u32 %s535_s3, 4  ;;  %s29_s18 = int_to_ptr.vmem [resolvable:$true] %s28_s18  ;;  %s48_s21 = int_to_ptr.hbm [resolvable:$true] %s47_s21 }
   0x7   :  { %31 = dma.hbm_to_vmem [thread:$0]  %s27_s16, 16, %s29_s18, [#allocation3]  }
   0x8   :  { %s426_s2 = smov [#allocation7]   ;;  %s427_s23 = smov 128  }
   0x9   :  { %s49_s22 = sshll.u32 %s426_s2, 4  ;;  %s428_s24 = smov 8   ;;  %s50_s22 = int_to_ptr.vmem [resolvable:$true] %s49_s22 }
   0xa   :  { %55 = dma.hbm_to_vmem [thread:$0]  %s48_s21, 1024, %s50_s22, [#allocation6], %s427_s23, %s427_s23, %s428_s24  }
   0xb   :  { %416 = dma.done.wait [#allocation3], 16  }
   0xc   :  { %417 = vsyncadd [#allocation3], 4294967280 }
   0xd   :  { %418 = dma.done.wait [#allocation6], 1040  }
   0xe   :  { %419 = vsyncadd [#allocation6], 4294966256  ;;  %v262_v0 = vld [vmem:[#allocation2] ss:$0 sm:$0xff]  ;;  %v90_v2 = vld [vmem:[#allocation7 + $0x30] sm:$0xff]  ;;  %s429_s1 = smov 32  }
   0xf   :  { %v91_v1 = vld [vmem:[#allocation7 + $0x38] sm:$0xff]  ;;  %78 = vrot.lane.b32.xlu0 %v262_v0, %s429_s1  ;;  %v89_v3 = vld [vmem:[#allocation7 + $0x28] sm:$0xff]  ;;  %v88_v4 = vld [vmem:[#allocation7 + $0x20] sm:$0xff]  ;;  %vm81_vm0 = vcmask 261120   ;;  %vm93_vm1 = vcmask 523264   ;;  %s430_s28 = smov 64  }
  0x10   :  { %105 = vmatpush.msra.mxu0 %v91_v1  ;;  %v87_v5 = vld [vmem:[#allocation7 + $0x18] sm:$0xff]  ;;  %v86_v6 = vld [vmem:[#allocation7 + $0x10] sm:$0xff]  ;;  %v85_v7 = vld [vmem:[#allocation7 + $0x8] sm:$0xff]  ;;  %vm192_vm6 = vcmask 253952   ;;  %s432_s15 = smov [#allocation9]   ;;  %s217_s19 = sshll.u32 %s540_s8, 4  ;;  %s218_s19 = int_to_ptr.hbm [resolvable:$true] %s217_s19 }
  0x11   :  { %v84_v8 = vld [vmem:[#allocation7] sm:$0xff]  ;;  %v263_v9 = vld [vmem:[#allocation5] ss:$0 sm:$0xff]  ;;  %v74_v10 = vld [vmem:[%s532_s0] sm:$0x1]  ;;  %s431_s0 = smov 96  }
  0x12   :  { %106 = vmatpush.msra.mxu0 %v90_v2  ;;  %139 = vrot.lane.b32.xlu1 %v263_v9, %s429_s1  ;;  %v92_v13 = vld [vmem:[%s536_s4] sm:$0x1]  ;;  %v162_v37 = vld [vmem:[%s537_s5 + $0x18] sm:$0xff]  ;;  %v161_v38 = vld [vmem:[%s537_s5 + $0x10] sm:$0xff]  ;;  %s215_s16 = sshll.u32 %s432_s15, 4  ;;  %s228_s22 = sshll.u32 %s541_s9, 4  ;;  %s216_s16 = int_to_ptr.vmem [resolvable:$true] %s215_s16  ;;  %s229_s22 = int_to_ptr.hbm [resolvable:$true] %s228_s22 }
  0x13   :  { %181 = vmatpush.msra.mxu1 %v162_v37  ;;  %v160_v39 = vld [vmem:[%s537_s5 + $0x8] sm:$0xff]  ;;  %v159_v40 = vld [vmem:[%s537_s5] sm:$0xff]  ;;  %s433_s5 = smov [#allocation11]   ;;  %s434_s8 = smov [#allocation8]   ;;  %vm189_vm7 = vcmask 24576  }
  0x14   :  { %107 = vmatpush.msra.mxu0 %v89_v3  ;;  %s226_s20 = sshll.u32 %s433_s5, 4  ;;  %v163_v45 = vld [vmem:[%s538_s6] sm:$0x1]  ;;  %s206_s26 = sshll.u32 %s539_s7, 4  ;;  %s227_s20 = int_to_ptr.vmem [resolvable:$true] %s226_s20  ;;  %s207_s26 = int_to_ptr.hbm [resolvable:$true] %s206_s26 }
  0x15   :  { %182 = vmatpush.msra.mxu1 %v161_v38 }
  0x16   :  { %108 = vmatpush.msra.mxu0 %v88_v4 }
  0x17   :  { %183 = vmatpush.msra.mxu1 %v160_v39 }
  0x18   :  { %109 = vmatpush.msra.mxu0 %v87_v5 }
  0x19   :  { %184 = vmatpush.msra.mxu1 %v159_v40 }
  0x1a   :  { %110 = vmatpush.msra.mxu0 %v86_v6 }
  0x1c   :  { %111 = vmatpush.msra.mxu0 %v85_v7 }
  0x1e   :  { %112 = vmatpush.msra.mxu0 %v84_v8 }
  0x81   :  { %v79_v11 = vpop.permute.xlu0 %78 }
  0x82   :  { %v82_v12 = vsel %vm81_vm0, %v74_v10, %v79_v11 }
  0x83   :  { %248 = vmatmul.msk.f32.vlgmr.msra.gmra.mxu0 %vm93_vm1, %v82_v12 }
  0x84   :  { %v140_v32 = vpop.permute.xlu1 %139 }
 0x100   :  { %v114_v14 = vpop.f32.mrf.mxu0 }
 0x101   :  { %v115_v15 = vadd.f32 %v114_v14, %v92_v13 }
 0x103   :  { %264 = vtanh.f32 %v115_v15  ;;  %v249_v17 = vmul.f32 -1.442695, %v115_v15 }
 0x105   :  { %266 = vpow2.f32 %v249_v17 }
 0x109   :  { %v265_v16 = vpop.eup %264 }
 0x10a   :  { %144 = vrot.lane.b32.xlu0 %v265_v16, %s430_s28 }
 0x10b   :  { %v267_v18 = vpop.eup %266 }
 0x10c   :  { %v120_v19 = vadd.f32 1.0, %v267_v18 }
 0x10e   :  { %268 = vrcp.f32 %v120_v19  ;;  %v132_v25 = vand.u32 2147483648, %v120_v19  ;;  %vm126_vm3 = vweird.f32 %v120_v19  ;;  %v130_v26 = vand.u32 2147483647, %v120_v19 }
 0x110   :  { %v133_v28 = vor.u32 1.1754944e-38, %v132_v25  ;;  %vm131_vm5 = vcmp.eq.f32.partialorder %v130_v26, 8.507059e+37 }
 0x114   :  { %v269_v20 = vpop.eup %268 }
 0x115   :  { %v122_v21 = vmul.f32 %v269_v20, %v120_v19  ;;  %vm127_vm2 = vweird.f32 %v269_v20 }
 0x116   :  { %vm128_vm4 = vmor %vm126_vm3, %vm127_vm2 }
 0x117   :  { %v123_v22 = vsub.f32 1.0, %v122_v21 }
 0x119   :  { %v124_v23 = vmul.f32 %v269_v20, %v123_v22 }
 0x11b   :  { %v125_v24 = vadd.f32 %v269_v20, %v124_v23 }
 0x11d   :  { %v129_v27 = vsel %vm128_vm4, %v269_v20, %v125_v24 }
 0x11e   :  { %v134_v29 = vsel %vm131_vm5, %v133_v28, %v129_v27 }
 0x11f   :  { %v142_v33 = vmul.f32 %v140_v32, %v134_v29 }
 0x17c   :  { %v145_v30 = vpop.permute.xlu0 %144 }
 0x17d   :  { %v147_v31 = vmul.f32 %v145_v30, %v134_v29 }
 0x17f   :  { %149 = vrot.lane.b32.xlu1 %v147_v31, %s429_s1 }
 0x1f1   :  { %v150_v34 = vpop.permute.xlu1 %149 }
 0x1f2   :  { %v152_v35 = vadd.f32 %v150_v34, %v142_v33 }
 0x1f4   :  { %270 = vtanh.f32 %v152_v35  ;;  %195 = vrot.lane.b32.xlu0 %v152_v35, %s431_s0 }
 0x1fa   :  { %v271_v36 = vpop.eup %270 }
 0x1fb   :  { %155 = vrot.lane.b32.xlu2 %v271_v36, %s430_s28 }
 0x255   :  { %v156_v41 = vpop.permute.xlu2 %155 }
 0x256   :  { %v158_v42 = vmul.f32 %v156_v41, %v134_v29 }
 0x258   :  { %165 = vrot.lane.b32.xlu2 %v158_v42, %s429_s1  ;;  %s204_s1 = sshll.u32 %s434_s8, 4  ;;  %s205_s1 = int_to_ptr.vmem [resolvable:$true] %s204_s1 }
 0x266   :  { %v196_v43 = vpop.permute.xlu0 %195 }
 0x267   :  { %198 = vst.msk [vmem:[#allocation11] sm:$0x1] %vm192_vm6, %v196_v43 }
 0x2b2   :  { %v166_v44 = vpop.permute.xlu2 %165 }
 0x2b3   :  { %193 = vst.msk [vmem:[#allocation9] sm:$0x1] %vm192_vm6, %v166_v44  ;;  %250 = vmatmul.msk.f32.vlgmr.msra.gmra.mxu1 %vm81_vm0, %v166_v44 }
 0x2b4   :  { %220 = dma.vmem_to_hbm [thread:$0]  %s216_s16, 16, %s218_s19, [#allocation10]  }
 0x2b5   :  { %231 = dma.vmem_to_hbm [thread:$0]  %s227_s20, 16, %s229_s22, [#allocation10]  }
 0x330   :  { %v186_v46 = vpop.f32.mrf.mxu1 }
 0x331   :  { %v187_v47 = vadd.f32 %v186_v46, %v163_v45 }
 0x333   :  { %190 = vst.msk [vmem:[#allocation8] sm:$0x1] %vm189_vm7, %v187_v47 }
 0x334   :  { %209 = dma.vmem_to_hbm [thread:$0]  %s205_s1, 16, %s207_s26, [#allocation4]  }
 0x335   :  { %420 = dma.done.wait [#allocation4], 16  }
 0x336   :  { %421 = vsyncadd [#allocation4], 4294967280 }
 0x337   :  { %422 = dma.done.wait [#allocation10], 32  }
 0x338   :  { %423 = vsyncadd [#allocation10], 4294967264 }
 0x339   :  { %244 = vsyncpa [#allocation3], 1 }
 0x33a   :  { %245 = vsyncpa [#allocation6], 1 }
 0x33b   :  { %246 = vsyncpa [#allocation4], 1 }
 0x33c   :  { %247 = vsyncpa [#allocation10], 1 }

</bundles_post_ra>
